<compile_context>
chip_gen: v7x
topology: tpu7x:2x2x1
jax: 0.10.0
libtpu: 0.0.40
codegen_flags: <defaults>
</compile_context>

<pallas_src>
import jax
import jax.numpy as jnp
from jax.experimental import pallas as pl
from jax.experimental.pallas import tpu as pltpu


def _round_up(x, m):
    return ((x + m - 1) // m) * m


def _spectral_mix_kernel(x_ref, w_ref, o_ref):
    # x_ref: (TM, BHp, 2*Cin_p)      packed [real | imag] on the contraction axis
    # w_ref: (TM, 2*Cin_p, 2*Cout_p) block-complex weight [[wr, wi], [-wi, wr]]
    # o_ref: (TM, BHp, 2*Cout_p)     packed [real | imag] on the lane axis
    o_ref[...] = jax.lax.dot_general(
        x_ref[...], w_ref[...],
        dimension_numbers=(((2,), (1,)), ((0,), (0,))),  # batched (BH,2Cin)@(2Cin,2Cout)
        preferred_element_type=jnp.float32,
    ).astype(o_ref.dtype)


def spectral_mix(xc, wc, *, tm=None):
    """xc: (M, BHp, 2*Cin_p); wc: (M, 2*Cin_p, 2*Cout_p) -> (M, BHp, 2*Cout_p) f32."""
    M, BHp, Kin = xc.shape
    Mw, Kin2, Kout = wc.shape
    assert Mw == M and Kin2 == Kin

    # Size the mode block so that double-buffered tiles stay well under the
    # scoped-VMEM limit (headroom for v7x's smaller 64 MiB physical VMEM).
    if tm is None:
        per_mode_bytes = (xc.dtype.itemsize * BHp * Kin
                          + wc.dtype.itemsize * Kin * Kout
                          + 4 * BHp * Kout)
        budget = 20 * 1024 * 1024  # bytes, for 2x (double buffering) of all tiles
        tm = max(1, budget // (2 * per_mode_bytes))
        tm = int(min(tm, M, 512))

    Mp = _round_up(M, tm)
    if Mp != M:
        xc = jnp.pad(xc, ((0, Mp - M), (0, 0), (0, 0)))
        wc = jnp.pad(wc, ((0, Mp - M), (0, 0), (0, 0)))

    flops = 2 * Mp * BHp * Kin * Kout
    bytes_accessed = (xc.size * xc.dtype.itemsize
                      + wc.size * wc.dtype.itemsize
                      + Mp * BHp * Kout * 4)

    out = pl.pallas_call(
        _spectral_mix_kernel,
        out_shape=jax.ShapeDtypeStruct((Mp, BHp, Kout), jnp.float32),
        grid_spec=pltpu.PrefetchScalarGridSpec(
            num_scalar_prefetch=0,
            grid=(Mp // tm,),
            in_specs=[
                pl.BlockSpec((tm, BHp, Kin), lambda m: (m, 0, 0)),
                pl.BlockSpec((tm, Kin, Kout), lambda m: (m, 0, 0)),
            ],
            out_specs=pl.BlockSpec((tm, BHp, Kout), lambda m: (m, 0, 0)),
        ),
        compiler_params=pltpu.CompilerParams(
            dimension_semantics=("parallel",),
            vmem_limit_bytes=32 * 1024 * 1024,
        ),
        cost_estimate=pl.CostEstimate(
            flops=flops, transcendentals=0, bytes_accessed=bytes_accessed),
    )(xc, wc)
    return out[:M]


class SpectralConv1d:
    """JAX/Pallas port of the PyTorch SpectralConv1d (mode_type=0, compression=0)."""

    def __init__(self, in_channels, out_channels, seq_len, modes1, key, use_bf16=False):
        self.in_channels = in_channels
        self.out_channels = out_channels
        self.modes1 = modes1
        # mode_type == 0 path of the reference __init__
        self.modes2 = min(modes1, seq_len // 2)
        self.index = list(range(self.modes2))
        scale = 1.0 / (in_channels * out_channels)
        kr, ki = jax.random.split(key)
        shape = (in_channels, out_channels, len(self.index))
        # deterministic analogue of scale * torch.rand(..., dtype=cfloat)
        self.w_real = (scale * jax.random.uniform(kr, shape)).astype(jnp.float32)
        self.w_imag = (scale * jax.random.uniform(ki, shape)).astype(jnp.float32)
        # bf16 operands halve input DMA bytes (biggest win on bandwidth-bound v5e);
        # accumulation stays f32.  Off by default to keep bit-tight f32 semantics.
        self.use_bf16 = use_bf16

    def __call__(self, x):
        # layout: x is (B, H, Cin, N) float32 (same axis convention as the PyTorch module)
        B, H, E, N = x.shape
        M = self.modes2
        O = self.out_channels
        BH = B * H

        # TPU-friendly padded sizes: BH -> multiple of 8 (sublanes),
        # channels -> multiples of 64 so that 2*Cin_p and 2*Cout_p are multiples of 128
        # (lane-dense, unmasked stores).
        BHp = _round_up(BH, 8)
        Cin_p = _round_up(E, 64)
        Cout_p = _round_up(O, 64)

        x_ft = jnp.fft.rfft(x, axis=-1)                      # (B, H, E, N//2+1) complex64
        a = x_ft[..., :M]                                    # (B, H, E, M)
        a = a.reshape(BH, E, M).transpose(2, 0, 1)           # (M, BH, E) complex
        xr = jnp.real(a).astype(jnp.float32)
        xi = jnp.imag(a).astype(jnp.float32)
        pad_x = ((0, 0), (0, BHp - BH), (0, Cin_p - E))
        # pack [real | imag] along the contraction axis -> (M, BHp, 2*Cin_p)
        xc = jnp.concatenate([jnp.pad(xr, pad_x), jnp.pad(xi, pad_x)], axis=-1)

        # block-complex weight W = [[wr, wi], [-wi, wr]] -> (M, 2*Cin_p, 2*Cout_p)
        # (sign convention gives real = xr@wr - xi@wi, imag = xr@wi + xi@wr)
        wr = jnp.transpose(self.w_real, (2, 0, 1))           # (M, E, O)
        wi = jnp.transpose(self.w_imag, (2, 0, 1))
        pad_w = ((0, 0), (0, Cin_p - E), (0, Cout_p - O))
        wr_p = jnp.pad(wr, pad_w)
        wi_p = jnp.pad(wi, pad_w)
        top = jnp.concatenate([wr_p, wi_p], axis=-1)         # (M, Cin_p, 2*Cout_p)
        bot = jnp.concatenate([-wi_p, wr_p], axis=-1)
        wc = jnp.concatenate([top, bot], axis=1)             # (M, 2*Cin_p, 2*Cout_p)

        cdt = jnp.bfloat16 if self.use_bf16 else jnp.float32
        out = spectral_mix(xc.astype(cdt), wc.astype(cdt))   # (M, BHp, 2*Cout_p) f32

        out_r = out[:, :BH, :O]
        out_i = out[:, :BH, Cout_p:Cout_p + O]
        out_modes = (out_r + 1j * out_i).astype(jnp.complex64)   # (M, BH, O)
        out_modes = out_modes.transpose(1, 2, 0).reshape(B, H, O, M)
        # single pad op instead of zeros + scatter for the unused high modes
        out_ft = jnp.pad(out_modes, ((0, 0), (0, 0), (0, 0), (0, N // 2 + 1 - M)))
        return jnp.fft.irfft(out_ft, n=N, axis=-1)           # (B, H, O, N) float32


def _reference_forward(layer, x):
    """Pure-JAX reference mirroring the PyTorch forward (for a correctness check)."""
    B, H, E, N = x.shape
    M = layer.modes2
    w = layer.w_real + 1j * layer.w_imag                     # (E, O, M)
    x_ft = jnp.fft.rfft(x, axis=-1)
    a = x_ft[..., :M]
    out_modes = jnp.einsum('bjix,iox->bjox', a, w)
    out_ft = jnp.zeros((B, H, layer.out_channels, N // 2 + 1), dtype=jnp.complex64)
    out_ft = out_ft.at[..., :M].set(out_modes)
    return jnp.fft.irfft(out_ft, n=N, axis=-1)


if __name__ == "__main__":
    key = jax.random.PRNGKey(0)
    k_x, k_w = jax.random.split(key)

    B, H, in_channels, out_channels, N = 2, 2, 4, 4, 16
    modes1 = 8  # modes2 = min(8, 16 // 2) = 8

    x = jax.random.normal(k_x, (B, H, in_channels, N), dtype=jnp.float32)

    layer = SpectralConv1d(in_channels, out_channels, seq_len=N, modes1=modes1, key=k_w)

    y = jax.block_until_ready(layer(x))
    y_ref = jax.block_until_ready(_reference_forward(layer, x))

    assert y.shape == (B, H, out_channels, N)
    assert jnp.allclose(y, y_ref, atol=1e-4, rtol=1e-4), "mismatch vs pure-JAX reference"

    print("KERNEL_OK")
</pallas_src>

<mosaic_0001>
module attributes {stable_mosaic.version = 11 : i64} {
  func.func @_spectral_mix_kernel(%arg0: i32, %arg1: memref<8x8x128xf32, #tpu.memory_space<vmem>>, %arg2: memref<8x128x128xf32, #tpu.memory_space<vmem>>, %arg3: memref<8x8x128xf32, #tpu.memory_space<vmem>>) attributes {dimension_semantics = [#tpu.dimension_semantics<parallel>], iteration_bounds = array<i64: 1>, scalar_prefetch = 0 : i64, scratch_operands = 0 : i64, tpu.core_type = #tpu.core_type<tc>, window_params = [{transform_indices = @transform_0, window_bounds = array<i64: 8, 8, 128>}, {transform_indices = @transform_1, window_bounds = array<i64: 8, 128, 128>}, {transform_indices = @transform_2, window_bounds = array<i64: 8, 8, 128>}]} {
    %c0 = arith.constant 0 : index
    %c0_0 = arith.constant 0 : index
    %c0_1 = arith.constant 0 : index
    %0 = vector.load %arg1[%c0, %c0_0, %c0_1] : memref<8x8x128xf32, #tpu.memory_space<vmem>>, vector<8x8x128xf32>
    %c0_2 = arith.constant 0 : index
    %c0_3 = arith.constant 0 : index
    %c0_4 = arith.constant 0 : index
    %1 = vector.load %arg2[%c0_2, %c0_3, %c0_4] : memref<8x128x128xf32, #tpu.memory_space<vmem>>, vector<8x128x128xf32>
    %cst = arith.constant dense<0.000000e+00> : vector<8x8x128xf32>
    %2 = tpu.matmul %0, %1, %cst {dimension_numbers = #tpu.dot_dimension_numbers<[2], [1], [1], [2], [0, 0, 0, 1, 1, 2], [0], [0]>} : vector<8x8x128xf32>, vector<8x128x128xf32>, vector<8x8x128xf32> -> vector<8x8x128xf32>
    %c0_5 = arith.constant 0 : index
    %c0_6 = arith.constant 0 : index
    %c0_7 = arith.constant 0 : index
    %3 = vector.load %arg3[%c0_5, %c0_6, %c0_7] : memref<8x8x128xf32, #tpu.memory_space<vmem>>, vector<8x8x128xf32>
    tpu.vector_store %arg3[%c0_5, %c0_6, %c0_7], %2 {strides = array<i32>} : memref<8x8x128xf32, #tpu.memory_space<vmem>>, vector<8x8x128xf32>,
    return
  }
  func.func @transform_0(%arg0: i32) -> (i32, i32, i32) {
    %c0_i32 = arith.constant 0 : i32
    %c0_i32_0 = arith.constant 0 : i32
    %c0_i32_1 = arith.constant 0 : i32
    return %arg0, %c0_i32, %c0_i32_0 : i32, i32, i32
  }
  func.func @transform_1(%arg0: i32) -> (i32, i32, i32) {
    %c0_i32 = arith.constant 0 : i32
    %c0_i32_0 = arith.constant 0 : i32
    %c0_i32_1 = arith.constant 0 : i32
    return %arg0, %c0_i32, %c0_i32_0 : i32, i32, i32
  }
  func.func @transform_2(%arg0: i32) -> (i32, i32, i32) {
    %c0_i32 = arith.constant 0 : i32
    %c0_i32_0 = arith.constant 0 : i32
    %c0_i32_1 = arith.constant 0 : i32
    return %arg0, %c0_i32, %c0_i32_0 : i32, i32, i32
  }
}

</mosaic_0001>

<bundles_post_ra>
// kernel: tpu_custom_call.1
= control target key start
LH: loop header
LB: loop body
LE: loop exit
PB: predicated region body
PF: predicated region fallthrough
CT: control target
= control target key end

     0   :  { %7 = vsyncpa [#allocation3], 0  ;;  %s1598_s0 = inlined_call_operand.hbm [shape: f32[8,8,128], index: 0, kind: input, shape index: {}]   ;;  %s1599_s1 = inlined_call_operand.hbm [shape: f32[8,128,128], index: 1, kind: input, shape index: {}]   ;;  %s1600_s2 = inlined_call_operand.hbm [shape: f32[8,8,128], index: 2, kind: output, shape index: {}]  }
   0x1   :  { %8 = vsyncpa [#allocation6], 0 }
   0x2   :  { %9 = vsyncpa [#allocation4], 0  ;;  %s1450_s9 = smov [#allocation2]   ;;  %s1378_s13 = scalar_lea.hbm %s1598_s0, 1024 }
   0x3   :  { %s15_s10 = sshll.u32 %s1450_s9, 4  ;;  %p1379_p0 = scmp.ne.s32.totalorder %s1598_s0, %s1378_s13  ;;  %s16_s10 = int_to_ptr.vmem [resolvable:$true] %s15_s10 }
   0x4   :  { %p1382_p1 = scmp.lt.u32.totalorder %s1378_s13, %s1598_s0 }
   0x6   :  { %p1384_p2 = pnand %p1382_p1, %p1379_p0 }
   0x8   :  { %1387 = shalt.err (!%p1384_p2)
}
   0x9   :  { %s1388_s18 = scalar_lea.vmem %s16_s10, 1024  ;;  %p1393_p4 = scmp.lt.s32.totalorder %s16_s10, %s16_s10 }
   0xa   :  { %p1389_p3 = scmp.ne.s32.totalorder %s16_s10, %s1388_s18  ;;  %p1394_p5 = scmp.lt.s32.totalorder %s1388_s18, %s1388_s18 }
   0xc   :  { %p1395_p6 = por %p1394_p5, %p1393_p4 }
   0xe   :  { %p1396_p7 = pnand %p1395_p6, %p1389_p3 }
  0x10   :  { %1399 = shalt.err (!%p1396_p7)
}
  0x11   :  { %s1451_s19 = smov 128   ;;  %s1452_s20 = smov 8  }
  0x12   :  { %21 = dma.hbm_to_vmem [thread:$0]  %s1598_s0, 1024, %s16_s10, [#allocation3], %s1451_s19, %s1451_s19, %s1452_s20  }
  0x13   :  { %s1453_s23 = smov [#allocation5]   ;;  %s1400_s27 = scalar_lea.hbm %s1599_s1, 16384 }
  0x14   :  { %s27_s24 = sshll.u32 %s1453_s23, 4  ;;  %p1401_p8 = scmp.ne.s32.totalorder %s1599_s1, %s1400_s27  ;;  %s28_s24 = int_to_ptr.vmem [resolvable:$true] %s27_s24 }
  0x15   :  { %p1404_p9 = scmp.lt.u32.totalorder %s1400_s27, %s1599_s1 }
  0x17   :  { %p1406_p10 = pnand %p1404_p9, %p1401_p8 }
  0x19   :  { %1409 = shalt.err (!%p1406_p10)
}
  0x1a   :  { %s1410_s4 = scalar_lea.vmem %s28_s24, 16384  ;;  %p1415_p12 = scmp.lt.s32.totalorder %s28_s24, %s28_s24 }
  0x1b   :  { %p1411_p11 = scmp.ne.s32.totalorder %s28_s24, %s1410_s4  ;;  %p1416_p13 = scmp.lt.s32.totalorder %s1410_s4, %s1410_s4 }
  0x1d   :  { %p1417_p0 = por %p1416_p13, %p1415_p12 }
  0x1f   :  { %p1418_p1 = pnand %p1417_p0, %p1411_p11 }
  0x21   :  { %1421 = shalt.err (!%p1418_p1)
}
  0x22   :  { %33 = dma.hbm_to_vmem [thread:$0]  %s1599_s1, 16384, %s28_s24, [#allocation6], %s1451_s19, %s1451_s19, %s1452_s20  }
  0x23   :  { %1444 = dma.done.wait [#allocation3], 1024  }
  0x24   :  { %1445 = vsyncadd [#allocation3], 4294966272 }
  0x25   :  { %1446 = dma.done.wait [#allocation6], 16384  }
  0x26   :  { %1447 = vsyncadd [#allocation6], 4294950912  ;;  %v1454_v0 = vmov 0.0|0.0   ;;  %vm1455_vm0 = vmmov 0   ;;  %v1456_v1 = vmov 0.0   ;;  %v48_v2 = vld [vmem:[#allocation5] sm:$0xff] }
  0x27   :  { %1178 = vmatprep.subr.bf16.mxu0 %v1454_v0  ;;  %1202 = vmatprep.subr.bf16.mxu1 %v1454_v0  ;;  %v49_v3 = vld [vmem:[#allocation5 + $0x8] sm:$0xff]  ;;  %v64_v4 = vld [vmem:[#allocation5 + $0x80] sm:$0xff]  ;;  %v50_v7 = vld [vmem:[#allocation5 + $0x10] sm:$0xff]  ;;  %s1457_s1 = smov [#allocation7]  }
  0x28   :  { %930 = vmatprep.mubr.msk.f32.mxu0 %vm1455_vm0, %v1456_v1  ;;  %965 = vmatprep.mubr.msk.f32.mxu1 %vm1455_vm0, %v1456_v1  ;;  %v1179_v5 = vpack.c.bf16 %v49_v3, %v48_v2  ;;  %v65_v6 = vld [vmem:[#allocation5 + $0x88] sm:$0xff]  ;;  %v51_v8 = vld [vmem:[#allocation5 + $0x18] sm:$0xff]  ;;  %v66_v10 = vld [vmem:[#allocation5 + $0x90] sm:$0xff]  ;;  %s749_s6 = sshll.u32 %s1457_s1, 4  ;;  %s750_s6 = int_to_ptr.vmem [resolvable:$true] %s749_s6 }
  0x29   :  { %v1203_v9 = vpack.c.bf16 %v65_v6, %v64_v4  ;;  %v67_v11 = vld [vmem:[#allocation5 + $0x98] sm:$0xff]  ;;  %v1182_v12 = vpack.c.bf16 %v51_v8, %v50_v7  ;;  %v52_v14 = vld [vmem:[#allocation5 + $0x20] sm:$0xff]  ;;  %v53_v15 = vld [vmem:[#allocation5 + $0x28] sm:$0xff]  ;;  %s1422_s7 = scalar_lea.vmem %s750_s6, 1024  ;;  %p1427_p3 = scmp.lt.s32.totalorder %s750_s6, %s750_s6 }
  0x2a   :  { %1180 = vmatpush3.bf16.msra.mxu0 %v1179_v5  ;;  %v1206_v13 = vpack.c.bf16 %v67_v11, %v66_v10  ;;  %v68_v16 = vld [vmem:[#allocation5 + $0xa0] sm:$0xff]  ;;  %v69_v17 = vld [vmem:[#allocation5 + $0xa8] sm:$0xff]  ;;  %v1185_v18 = vpack.c.bf16 %v53_v15, %v52_v14  ;;  %v54_v20 = vld [vmem:[#allocation5 + $0x30] sm:$0xff]  ;;  %p1423_p2 = scmp.ne.s32.totalorder %s750_s6, %s1422_s7  ;;  %p1428_p4 = scmp.lt.s32.totalorder %s1422_s7, %s1422_s7 }
  0x2b   :  { %1204 = vmatpush3.bf16.msra.mxu1 %v1203_v9  ;;  %1181 = vmatprep.subr.bf16.mxu0 %v1454_v0  ;;  %v1209_v19 = vpack.c.bf16 %v69_v17, %v68_v16  ;;  %v55_v21 = vld [vmem:[#allocation5 + $0x38] sm:$0xff]  ;;  %v70_v22 = vld [vmem:[#allocation5 + $0xb0] sm:$0xff]  ;;  %v56_v26 = vld [vmem:[#allocation5 + $0x40] sm:$0xff] }
  0x2c   :  { %1205 = vmatprep.subr.bf16.mxu1 %v1454_v0  ;;  %v71_v23 = vld [vmem:[#allocation5 + $0xb8] sm:$0xff]  ;;  %v1188_v24 = vpack.c.bf16 %v55_v21, %v54_v20  ;;  %v57_v27 = vld [vmem:[#allocation5 + $0x48] sm:$0xff]  ;;  %v72_v28 = vld [vmem:[#allocation5 + $0xc0] sm:$0xff]  ;;  %p1429_p5 = por %p1428_p4, %p1427_p3 }
  0x2d   :  { %v1212_v25 = vpack.c.bf16 %v71_v23, %v70_v22  ;;  %v73_v29 = vld [vmem:[#allocation5 + $0xc8] sm:$0xff]  ;;  %v1191_v30 = vpack.c.bf16 %v57_v27, %v56_v26  ;;  %v58_v32 = vld [vmem:[#allocation5 + $0x50] sm:$0xff]  ;;  %v59_v33 = vld [vmem:[#allocation5 + $0x58] sm:$0xff] }
  0x2e   :  { %1183 = vmatpush3.bf16.msra.mxu0 %v1182_v12  ;;  %v1215_v31 = vpack.c.bf16 %v73_v29, %v72_v28  ;;  %v74_v34 = vld [vmem:[#allocation5 + $0xd0] sm:$0xff]  ;;  %v75_v35 = vld [vmem:[#allocation5 + $0xd8] sm:$0xff]  ;;  %v1194_v36 = vpack.c.bf16 %v59_v33, %v58_v32  ;;  %v60_v38 = vld [vmem:[#allocation5 + $0x60] sm:$0xff]  ;;  %p1430_p6 = pnand %p1429_p5, %p1423_p2 }
  0x2f   :  { %1207 = vmatpush3.bf16.msra.mxu1 %v1206_v13  ;;  %1184 = vmatprep.subr.bf16.mxu0 %v1454_v0  ;;  %v1218_v37 = vpack.c.bf16 %v75_v35, %v74_v34  ;;  %v61_v39 = vld [vmem:[#allocation5 + $0x68] sm:$0xff]  ;;  %v76_v40 = vld [vmem:[#allocation5 + $0xe0] sm:$0xff]  ;;  %v62_v44 = vld [vmem:[#allocation5 + $0x70] sm:$0xff] }
  0x30   :  { %1208 = vmatprep.subr.bf16.mxu1 %v1454_v0  ;;  %v77_v41 = vld [vmem:[#allocation5 + $0xe8] sm:$0xff]  ;;  %v1197_v42 = vpack.c.bf16 %v61_v39, %v60_v38  ;;  %v63_v45 = vld [vmem:[#allocation5 + $0x78] sm:$0xff]  ;;  %v78_v46 = vld [vmem:[#allocation5 + $0xf0] sm:$0xff] }
  0x31   :  { %v1221_v43 = vpack.c.bf16 %v77_v41, %v76_v40  ;;  %v79_v47 = vld [vmem:[#allocation5 + $0xf8] sm:$0xff]  ;;  %v1200_v48 = vpack.c.bf16 %v63_v45, %v62_v44  ;;  %v80_v50 = vld [vmem:[#allocation5 + $0x100] sm:$0xff]  ;;  %v81_v51 = vld [vmem:[#allocation5 + $0x108] sm:$0xff] }
  0x32   :  { %1186 = vmatpush3.bf16.msra.mxu0 %v1185_v18  ;;  %v1224_v49 = vpack.c.bf16 %v79_v47, %v78_v46  ;;  %v96_v52 = vld [vmem:[#allocation5 + $0x180] sm:$0xff]  ;;  %v97_v53 = vld [vmem:[#allocation5 + $0x188] sm:$0xff]  ;;  %v1227_v55 = vpack.c.bf16 %v81_v51, %v80_v50  ;;  %v82_v58 = vld [vmem:[#allocation5 + $0x110] sm:$0xff] }
  0x33   :  { %1210 = vmatpush3.bf16.msra.mxu1 %v1209_v19  ;;  %1187 = vmatprep.subr.bf16.mxu0 %v1454_v0  ;;  %v40_v54 = vld [vmem:[#allocation2] sm:$0xff]  ;;  %v41_v56 = vld [vmem:[#allocation2 + $0x8] sm:$0xff]  ;;  %v1251_v57 = vpack.c.bf16 %v97_v53, %v96_v52  ;;  %v83_v59 = vld [vmem:[#allocation5 + $0x118] sm:$0xff] }
  0x34   :  { %1211 = vmatprep.subr.bf16.mxu1 %v1454_v0  ;;  %v98_v60 = vld [vmem:[#allocation5 + $0x190] sm:$0xff]  ;;  %v99_v61 = vld [vmem:[#allocation5 + $0x198] sm:$0xff]  ;;  %v1230_v62 = vpack.c.bf16 %v83_v59, %v82_v58  ;;  %v84_v2 = vld [vmem:[#allocation5 + $0x120] sm:$0xff] }
  0x35   :  { %v1254_v63 = vpack.c.bf16 %v99_v61, %v98_v60  ;;  %v85_v3 = vld [vmem:[#allocation5 + $0x128] sm:$0xff]  ;;  %v100_v4 = vld [vmem:[#allocation5 + $0x1a0] sm:$0xff]  ;;  %v86_v8 = vld [vmem:[#allocation5 + $0x130] sm:$0xff] }
  0x36   :  { %1189 = vmatpush3.bf16.msra.mxu0 %v1188_v24  ;;  %v101_v5 = vld [vmem:[#allocation5 + $0x1a8] sm:$0xff]  ;;  %v1233_v6 = vpack.c.bf16 %v85_v3, %v84_v2  ;;  %v87_v9 = vld [vmem:[#allocation5 + $0x138] sm:$0xff]  ;;  %v102_v10 = vld [vmem:[#allocation5 + $0x1b0] sm:$0xff] }
  0x37   :  { %1213 = vmatpush3.bf16.msra.mxu1 %v1212_v25  ;;  %1190 = vmatprep.subr.bf16.mxu0 %v1454_v0  ;;  %v1257_v7 = vpack.c.bf16 %v101_v5, %v100_v4  ;;  %v103_v11 = vld [vmem:[#allocation5 + $0x1b8] sm:$0xff]  ;;  %v1236_v12 = vpack.c.bf16 %v87_v9, %v86_v8  ;;  %v88_v14 = vld [vmem:[#allocation5 + $0x140] sm:$0xff]  ;;  %v89_v15 = vld [vmem:[#allocation5 + $0x148] sm:$0xff] }
  0x38   :  { %1214 = vmatprep.subr.bf16.mxu1 %v1454_v0  ;;  %v1260_v13 = vpack.c.bf16 %v103_v11, %v102_v10  ;;  %v104_v16 = vld [vmem:[#allocation5 + $0x1c0] sm:$0xff]  ;;  %v105_v17 = vld [vmem:[#allocation5 + $0x1c8] sm:$0xff]  ;;  %v1239_v18 = vpack.c.bf16 %v89_v15, %v88_v14  ;;  %v90_v20 = vld [vmem:[#allocation5 + $0x150] sm:$0xff] }
  0x39   :  { %v1263_v19 = vpack.c.bf16 %v105_v17, %v104_v16  ;;  %v91_v21 = vld [vmem:[#allocation5 + $0x158] sm:$0xff]  ;;  %v106_v22 = vld [vmem:[#allocation5 + $0x1d0] sm:$0xff]  ;;  %v92_v26 = vld [vmem:[#allocation5 + $0x160] sm:$0xff] }
  0x3a   :  { %1192 = vmatpush3.bf16.msra.mxu0 %v1191_v30  ;;  %v107_v23 = vld [vmem:[#allocation5 + $0x1d8] sm:$0xff]  ;;  %v1242_v24 = vpack.c.bf16 %v91_v21, %v90_v20  ;;  %v93_v27 = vld [vmem:[#allocation5 + $0x168] sm:$0xff]  ;;  %v108_v28 = vld [vmem:[#allocation5 + $0x1e0] sm:$0xff] }
  0x3b   :  { %1216 = vmatpush3.bf16.msra.mxu1 %v1215_v31  ;;  %1193 = vmatprep.subr.bf16.mxu0 %v1454_v0  ;;  %v1266_v25 = vpack.c.bf16 %v107_v23, %v106_v22  ;;  %v109_v29 = vld [vmem:[#allocation5 + $0x1e8] sm:$0xff]  ;;  %v1245_v30 = vpack.c.bf16 %v93_v27, %v92_v26  ;;  %v94_v32 = vld [vmem:[#allocation5 + $0x170] sm:$0xff]  ;;  %v95_v33 = vld [vmem:[#allocation5 + $0x178] sm:$0xff] }
  0x3c   :  { %1217 = vmatprep.subr.bf16.mxu1 %v1454_v0  ;;  %v1269_v31 = vpack.c.bf16 %v109_v29, %v108_v28  ;;  %v110_v34 = vld [vmem:[#allocation5 + $0x1f0] sm:$0xff]  ;;  %v111_v35 = vld [vmem:[#allocation5 + $0x1f8] sm:$0xff]  ;;  %v112_v38 = vld [vmem:[#allocation5 + $0x200] sm:$0xff] }
  0x3d   :  { %v113_v39 = vld [vmem:[#allocation5 + $0x208] sm:$0xff]  ;;  %v128_v40 = vld [vmem:[#allocation5 + $0x280] sm:$0xff]  ;;  %v43_v44 = vld [vmem:[#allocation2 + $0x18] sm:$0xff] }
  0x3e   :  { %1195 = vmatpush3.bf16.msra.mxu0 %v1194_v36  ;;  %v1248_v36 = vpack.c.bf16 %v95_v33, %v94_v32  ;;  %v129_v41 = vld [vmem:[#allocation5 + $0x288] sm:$0xff]  ;;  %v114_v46 = vld [vmem:[#allocation5 + $0x210] sm:$0xff]  ;;  %v115_v47 = vld [vmem:[#allocation5 + $0x218] sm:$0xff] }
  0x3f   :  { %1219 = vmatpush3.bf16.msra.mxu1 %v1218_v37  ;;  %1196 = vmatprep.subr.bf16.mxu0 %v1454_v0  ;;  %v1272_v37 = vpack.c.bf16 %v111_v35, %v110_v34  ;;  %v1299_v45 = vpack.c.bf16 %v129_v41, %v128_v40  ;;  %v1278_v50 = vpack.c.bf16 %v115_v47, %v114_v46  ;;  %v116_v52 = vld [vmem:[#allocation5 + $0x220] sm:$0xff]  ;;  %v117_v53 = vld [vmem:[#allocation5 + $0x228] sm:$0xff]  ;;  %v118_v58 = vld [vmem:[#allocation5 + $0x230] sm:$0xff] }
  0x40   :  { %1220 = vmatprep.subr.bf16.mxu1 %v1454_v0  ;;  %v119_v59 = vld [vmem:[#allocation5 + $0x238] sm:$0xff]  ;;  %v134_v60 = vld [vmem:[#allocation5 + $0x2b0] sm:$0xff]  ;;  %v120_v2 = vld [vmem:[#allocation5 + $0x240] sm:$0xff] }
  0x41   :  { %v135_v61 = vld [vmem:[#allocation5 + $0x2b8] sm:$0xff]  ;;  %v121_v3 = vld [vmem:[#allocation5 + $0x248] sm:$0xff]  ;;  %v136_v4 = vld [vmem:[#allocation5 + $0x2c0] sm:$0xff] }
  0x42   :  { %1198 = vmatpush3.bf16.msra.mxu0 %v1197_v42  ;;  %v42_v42 = vld [vmem:[#allocation2 + $0x10] sm:$0xff]  ;;  %v137_v5 = vld [vmem:[#allocation5 + $0x2c8] sm:$0xff]  ;;  %v123_v9 = vld [vmem:[#allocation5 + $0x258] sm:$0xff] }
  0x43   :  { %1222 = vmatpush3.bf16.msra.mxu1 %v1221_v43  ;;  %1199 = vmatprep.subr.bf16.mxu0 %v1454_v0  ;;  %v1275_v43 = vpack.c.bf16 %v113_v39, %v112_v38  ;;  %v122_v8 = vld [vmem:[#allocation5 + $0x250] sm:$0xff]  ;;  %v139_v11 = vld [vmem:[#allocation5 + $0x2d8] sm:$0xff]  ;;  %v124_v14 = vld [vmem:[#allocation5 + $0x260] sm:$0xff] }
  0x44   :  { %1223 = vmatprep.subr.bf16.mxu1 %v1454_v0  ;;  %v138_v10 = vld [vmem:[#allocation5 + $0x2d0] sm:$0xff]  ;;  %v125_v15 = vld [vmem:[#allocation5 + $0x268] sm:$0xff]  ;;  %v140_v16 = vld [vmem:[#allocation5 + $0x2e0] sm:$0xff] }
  0x45   :  { %v141_v17 = vld [vmem:[#allocation5 + $0x2e8] sm:$0xff]  ;;  %v126_v20 = vld [vmem:[#allocation5 + $0x270] sm:$0xff]  ;;  %v127_v21 = vld [vmem:[#allocation5 + $0x278] sm:$0xff] }
  0x46   :  { %1201 = vmatpush3.bf16.msra.mxu0 %v1200_v48  ;;  %v130_v48 = vld [vmem:[#allocation5 + $0x290] sm:$0xff]  ;;  %v143_v23 = vld [vmem:[#allocation5 + $0x2f8] sm:$0xff]  ;;  %v144_v26 = vld [vmem:[#allocation5 + $0x300] sm:$0xff] }
  0x47   :  { %1225 = vmatpush3.bf16.msra.mxu1 %v1224_v49  ;;  %1226 = vmatprep.subr.bf16.mxu0 %v1454_v0  ;;  %v131_v49 = vld [vmem:[#allocation5 + $0x298] sm:$0xff]  ;;  %v142_v22 = vld [vmem:[#allocation5 + $0x2f0] sm:$0xff]  ;;  %v145_v27 = vld [vmem:[#allocation5 + $0x308] sm:$0xff] }
  0x48   :  { %1250 = vmatprep.subr.bf16.mxu1 %v1454_v0  ;;  %v1302_v51 = vpack.c.bf16 %v131_v49, %v130_v48  ;;  %v160_v28 = vld [vmem:[#allocation5 + $0x380] sm:$0xff]  ;;  %v161_v29 = vld [vmem:[#allocation5 + $0x388] sm:$0xff]  ;;  %v146_v34 = vld [vmem:[#allocation5 + $0x310] sm:$0xff] }
  0x49   :  { %931 = vmatmul.mubr.f32.vlgmr.msra.gmra.mrb[0].mxu0 %v40_v54  ;;  %v132_v54 = vld [vmem:[#allocation5 + $0x2a0] sm:$0xff]  ;;  %v45_v32 = vld [vmem:[#allocation2 + $0x28] sm:$0xff]  ;;  %v1347_v33 = vpack.c.bf16 %v161_v29, %v160_v28  ;;  %v147_v35 = vld [vmem:[#allocation5 + $0x318] sm:$0xff] }
  0x4a   :  { %966 = vmatmul.mubr.f32.vlgmr.msra.gmra.mrb[0].mxu1 %v41_v56  ;;  %1228 = vmatpush3.bf16.msra.mxu0 %v1227_v55  ;;  %v133_v55 = vld [vmem:[#allocation5 + $0x2a8] sm:$0xff]  ;;  %v1281_v56 = vpack.c.bf16 %v117_v53, %v116_v52  ;;  %v1326_v38 = vpack.c.bf16 %v147_v35, %v146_v34  ;;  %v148_v40 = vld [vmem:[#allocation5 + $0x320] sm:$0xff]  ;;  %v150_v46 = vld [vmem:[#allocation5 + $0x330] sm:$0xff] }
  0x4b   :  { %1252 = vmatpush3.bf16.msra.mxu1 %v1251_v57  ;;  %1229 = vmatprep.subr.bf16.mxu0 %v1454_v0  ;;  %v1305_v57 = vpack.c.bf16 %v133_v55, %v132_v54  ;;  %v149_v41 = vld [vmem:[#allocation5 + $0x328] sm:$0xff]  ;;  %v151_v47 = vld [vmem:[#allocation5 + $0x338] sm:$0xff]  ;;  %v166_v48 = vld [vmem:[#allocation5 + $0x3b0] sm:$0xff] }
  0x4c   :  { %1253 = vmatprep.subr.bf16.mxu1 %v1454_v0  ;;  %1000 = vmatprep.mubr.msk.f32.mxu0 %vm1455_vm0, %v1456_v1  ;;  %v167_v49 = vld [vmem:[#allocation5 + $0x3b8] sm:$0xff]  ;;  %v152_v52 = vld [vmem:[#allocation5 + $0x340] sm:$0xff]  ;;  %v169_v54 = vld [vmem:[#allocation5 + $0x3c8] sm:$0xff] }
  0x4d   :  { %1035 = vmatprep.mubr.msk.f32.mxu1 %vm1455_vm0, %v1456_v1  ;;  %v168_v53 = vld [vmem:[#allocation5 + $0x3c0] sm:$0xff] }
  0x4e   :  { %1231 = vmatpush3.bf16.msra.mxu0 %v1230_v62  ;;  %v1284_v62 = vpack.c.bf16 %v119_v59, %v118_v58  ;;  %v155_v58 = vld [vmem:[#allocation5 + $0x358] sm:$0xff]  ;;  %v170_v59 = vld [vmem:[#allocation5 + $0x3d0] sm:$0xff] }
  0x4f   :  { %1255 = vmatpush3.bf16.msra.mxu1 %v1254_v63  ;;  %1232 = vmatprep.subr.bf16.mxu0 %v1454_v0  ;;  %v1308_v63 = vpack.c.bf16 %v135_v61, %v134_v60  ;;  %v171_v60 = vld [vmem:[#allocation5 + $0x3d8] sm:$0xff] }
  0x50   :  { %1256 = vmatprep.subr.bf16.mxu1 %v1454_v0 }
  0x52   :  { %1234 = vmatpush3.bf16.msra.mxu0 %v1233_v6  ;;  %v1287_v6 = vpack.c.bf16 %v121_v3, %v120_v2  ;;  %v157_v2 = vld [vmem:[#allocation5 + $0x368] sm:$0xff]  ;;  %v172_v3 = vld [vmem:[#allocation5 + $0x3e0] sm:$0xff] }
  0x53   :  { %1258 = vmatpush3.bf16.msra.mxu1 %v1257_v7  ;;  %1235 = vmatprep.subr.bf16.mxu0 %v1454_v0  ;;  %v1311_v7 = vpack.c.bf16 %v137_v5, %v136_v4  ;;  %v173_v4 = vld [vmem:[#allocation5 + $0x3e8] sm:$0xff] }
  0x54   :  { %1259 = vmatprep.subr.bf16.mxu1 %v1454_v0 }
  0x56   :  { %1237 = vmatpush3.bf16.msra.mxu0 %v1236_v12  ;;  %v1290_v12 = vpack.c.bf16 %v123_v9, %v122_v8  ;;  %v159_v8 = vld [vmem:[#allocation5 + $0x378] sm:$0xff]  ;;  %v174_v9 = vld [vmem:[#allocation5 + $0x3f0] sm:$0xff] }
  0x57   :  { %1261 = vmatpush3.bf16.msra.mxu1 %v1260_v13  ;;  %1238 = vmatprep.subr.bf16.mxu0 %v1454_v0  ;;  %v1314_v13 = vpack.c.bf16 %v139_v11, %v138_v10  ;;  %v175_v10 = vld [vmem:[#allocation5 + $0x3f8] sm:$0xff] }
  0x58   :  { %1262 = vmatprep.subr.bf16.mxu1 %v1454_v0 }
  0x5a   :  { %1240 = vmatpush3.bf16.msra.mxu0 %v1239_v18  ;;  %v1293_v18 = vpack.c.bf16 %v125_v15, %v124_v14  ;;  %v47_v14 = vld [vmem:[#allocation2 + $0x38] sm:$0xff] }
  0x5b   :  { %1264 = vmatpush3.bf16.msra.mxu1 %v1263_v19  ;;  %1241 = vmatprep.subr.bf16.mxu0 %v1454_v0  ;;  %v1317_v19 = vpack.c.bf16 %v141_v17, %v140_v16 }
  0x5c   :  { %1265 = vmatprep.subr.bf16.mxu1 %v1454_v0 }
  0x5e   :  { %1243 = vmatpush3.bf16.msra.mxu0 %v1242_v24  ;;  %v1296_v24 = vpack.c.bf16 %v127_v21, %v126_v20 }
  0x5f   :  { %1267 = vmatpush3.bf16.msra.mxu1 %v1266_v25  ;;  %1244 = vmatprep.subr.bf16.mxu0 %v1454_v0  ;;  %v1320_v25 = vpack.c.bf16 %v143_v23, %v142_v22 }
  0x60   :  { %1268 = vmatprep.subr.bf16.mxu1 %v1454_v0 }
  0x62   :  { %1246 = vmatpush3.bf16.msra.mxu0 %v1245_v30  ;;  %v44_v30 = vld [vmem:[#allocation2 + $0x20] sm:$0xff] }
  0x63   :  { %1270 = vmatpush3.bf16.msra.mxu1 %v1269_v31  ;;  %1247 = vmatprep.subr.bf16.mxu0 %v1454_v0  ;;  %v1323_v31 = vpack.c.bf16 %v145_v27, %v144_v26 }
  0x64   :  { %1271 = vmatprep.subr.bf16.mxu1 %v1454_v0 }
  0x66   :  { %1249 = vmatpush3.bf16.msra.mxu0 %v1248_v36  ;;  %v162_v36 = vld [vmem:[#allocation5 + $0x390] sm:$0xff] }
  0x67   :  { %1273 = vmatpush3.bf16.msra.mxu1 %v1272_v37  ;;  %1274 = vmatprep.subr.bf16.mxu0 %v1454_v0  ;;  %v163_v37 = vld [vmem:[#allocation5 + $0x398] sm:$0xff] }
  0x68   :  { %1298 = vmatprep.subr.bf16.mxu1 %v1454_v0  ;;  %v1350_v39 = vpack.c.bf16 %v163_v37, %v162_v36 }
  0x69   :  { %1001 = vmatmul.mubr.f32.vlgmr.msra.gmra.mrb[2].mxu0 %v42_v42  ;;  %v164_v42 = vld [vmem:[#allocation5 + $0x3a0] sm:$0xff] }
  0x6a   :  { %1036 = vmatmul.mubr.f32.vlgmr.msra.gmra.mrb[2].mxu1 %v43_v44  ;;  %1276 = vmatpush3.bf16.msra.mxu0 %v1275_v43  ;;  %v165_v43 = vld [vmem:[#allocation5 + $0x3a8] sm:$0xff]  ;;  %v1329_v44 = vpack.c.bf16 %v149_v41, %v148_v40 }
  0x6b   :  { %1300 = vmatpush3.bf16.msra.mxu1 %v1299_v45  ;;  %1277 = vmatprep.subr.bf16.mxu0 %v1454_v0  ;;  %v1353_v45 = vpack.c.bf16 %v165_v43, %v164_v42 }
  0x6c   :  { %1301 = vmatprep.subr.bf16.mxu1 %v1454_v0  ;;  %1070 = vmatprep.mubr.msk.f32.mxu0 %vm1455_vm0, %v1456_v1 }
  0x6d   :  { %1105 = vmatprep.mubr.msk.f32.mxu1 %vm1455_vm0, %v1456_v1 }
  0x6e   :  { %1279 = vmatpush3.bf16.msra.mxu0 %v1278_v50  ;;  %v1332_v50 = vpack.c.bf16 %v151_v47, %v150_v46 }
  0x6f   :  { %1303 = vmatpush3.bf16.msra.mxu1 %v1302_v51  ;;  %1280 = vmatprep.subr.bf16.mxu0 %v1454_v0  ;;  %v1356_v51 = vpack.c.bf16 %v167_v49, %v166_v48 }
  0x70   :  { %1304 = vmatprep.subr.bf16.mxu1 %v1454_v0 }
  0x72   :  { %1282 = vmatpush3.bf16.msra.mxu0 %v1281_v56  ;;  %v1359_v56 = vpack.c.bf16 %v169_v54, %v168_v53 }
  0x73   :  { %1306 = vmatpush3.bf16.msra.mxu1 %v1305_v57  ;;  %1283 = vmatprep.subr.bf16.mxu0 %v1454_v0  ;;  %v154_v57 = vld [vmem:[#allocation5 + $0x350] sm:$0xff] }
  0x74   :  { %1307 = vmatprep.subr.bf16.mxu1 %v1454_v0  ;;  %v1338_v61 = vpack.c.bf16 %v155_v58, %v154_v57 }
  0x76   :  { %1285 = vmatpush3.bf16.msra.mxu0 %v1284_v62  ;;  %v1362_v62 = vpack.c.bf16 %v171_v60, %v170_v59 }
  0x77   :  { %1309 = vmatpush3.bf16.msra.mxu1 %v1308_v63  ;;  %1286 = vmatprep.subr.bf16.mxu0 %v1454_v0  ;;  %v156_v63 = vld [vmem:[#allocation5 + $0x360] sm:$0xff] }
  0x78   :  { %1310 = vmatprep.subr.bf16.mxu1 %v1454_v0  ;;  %v1341_v5 = vpack.c.bf16 %v157_v2, %v156_v63 }
  0x7a   :  { %1288 = vmatpush3.bf16.msra.mxu0 %v1287_v6  ;;  %v1365_v6 = vpack.c.bf16 %v173_v4, %v172_v3 }
  0x7b   :  { %1312 = vmatpush3.bf16.msra.mxu1 %v1311_v7  ;;  %1289 = vmatprep.subr.bf16.mxu0 %v1454_v0  ;;  %v158_v7 = vld [vmem:[#allocation5 + $0x370] sm:$0xff] }
  0x7c   :  { %1313 = vmatprep.subr.bf16.mxu1 %v1454_v0  ;;  %v1344_v11 = vpack.c.bf16 %v159_v8, %v158_v7 }
  0x7e   :  { %1291 = vmatpush3.bf16.msra.mxu0 %v1290_v12  ;;  %v1368_v12 = vpack.c.bf16 %v175_v10, %v174_v9 }
  0x7f   :  { %1315 = vmatpush3.bf16.msra.mxu1 %v1314_v13  ;;  %1292 = vmatprep.subr.bf16.mxu0 %v1454_v0  ;;  %v46_v13 = vld [vmem:[#allocation2 + $0x30] sm:$0xff] }
  0x80   :  { %1316 = vmatprep.subr.bf16.mxu1 %v1454_v0 }
  0x82   :  { %1294 = vmatpush3.bf16.msra.mxu0 %v1293_v18 }
  0x83   :  { %1318 = vmatpush3.bf16.msra.mxu1 %v1317_v19  ;;  %1295 = vmatprep.subr.bf16.mxu0 %v1454_v0 }
  0x84   :  { %1319 = vmatprep.subr.bf16.mxu1 %v1454_v0 }
  0x86   :  { %1297 = vmatpush3.bf16.msra.mxu0 %v1296_v24 }
  0x87   :  { %1321 = vmatpush3.bf16.msra.mxu1 %v1320_v25  ;;  %1322 = vmatprep.subr.bf16.mxu0 %v1454_v0 }
  0x88   :  { %1346 = vmatprep.subr.bf16.mxu1 %v1454_v0 }
  0x89   :  { %1071 = vmatmul.mubr.f32.vlgmr.msra.gmra.mrb[4].mxu0 %v44_v30 }
  0x8a   :  { %1106 = vmatmul.mubr.f32.vlgmr.msra.gmra.mrb[4].mxu1 %v45_v32  ;;  %1324 = vmatpush3.bf16.msra.mxu0 %v1323_v31 }
  0x8b   :  { %1348 = vmatpush3.bf16.msra.mxu1 %v1347_v33  ;;  %1325 = vmatprep.subr.bf16.mxu0 %v1454_v0 }
  0x8c   :  { %1349 = vmatprep.subr.bf16.mxu1 %v1454_v0  ;;  %1140 = vmatprep.mubr.msk.f32.mxu0 %vm1455_vm0, %v1456_v1 }
  0x8d   :  { %1175 = vmatprep.mubr.msk.f32.mxu1 %vm1455_vm0, %v1456_v1  ;;  %v153_v1 = vld [vmem:[#allocation5 + $0x348] sm:$0xff] }
  0x8e   :  { %1327 = vmatpush3.bf16.msra.mxu0 %v1326_v38  ;;  %v1335_v55 = vpack.c.bf16 %v153_v1, %v152_v52 }
  0x8f   :  { %1351 = vmatpush3.bf16.msra.mxu1 %v1350_v39  ;;  %1328 = vmatprep.subr.bf16.mxu0 %v1454_v0 }
  0x90   :  { %1352 = vmatprep.subr.bf16.mxu1 %v1454_v0 }
  0x92   :  { %1330 = vmatpush3.bf16.msra.mxu0 %v1329_v44 }
  0x93   :  { %1354 = vmatpush3.bf16.msra.mxu1 %v1353_v45  ;;  %1331 = vmatprep.subr.bf16.mxu0 %v1454_v0 }
  0x94   :  { %1355 = vmatprep.subr.bf16.mxu1 %v1454_v0 }
  0x96   :  { %1333 = vmatpush3.bf16.msra.mxu0 %v1332_v50 }
  0x97   :  { %1357 = vmatpush3.bf16.msra.mxu1 %v1356_v51  ;;  %1334 = vmatprep.subr.bf16.mxu0 %v1454_v0 }
  0x98   :  { %1358 = vmatprep.subr.bf16.mxu1 %v1454_v0 }
  0x9a   :  { %1336 = vmatpush3.bf16.msra.mxu0 %v1335_v55 }
  0x9b   :  { %1360 = vmatpush3.bf16.msra.mxu1 %v1359_v56  ;;  %1337 = vmatprep.subr.bf16.mxu0 %v1454_v0 }
  0x9c   :  { %1361 = vmatprep.subr.bf16.mxu1 %v1454_v0 }
  0x9e   :  { %1339 = vmatpush3.bf16.msra.mxu0 %v1338_v61 }
  0x9f   :  { %1363 = vmatpush3.bf16.msra.mxu1 %v1362_v62  ;;  %1340 = vmatprep.subr.bf16.mxu0 %v1454_v0 }
  0xa0   :  { %1364 = vmatprep.subr.bf16.mxu1 %v1454_v0 }
  0xa2   :  { %1342 = vmatpush3.bf16.msra.mxu0 %v1341_v5 }
  0xa3   :  { %1366 = vmatpush3.bf16.msra.mxu1 %v1365_v6  ;;  %1343 = vmatprep.subr.bf16.mxu0 %v1454_v0 }
  0xa4   :  { %1367 = vmatprep.subr.bf16.mxu1 %v1454_v0 }
  0xa6   :  { %1345 = vmatpush3.bf16.msra.mxu0 %v1344_v11 }
  0xa7   :  { %1369 = vmatpush3.bf16.msra.mxu1 %v1368_v12 }
  0xa9   :  { %1141 = vmatmul.mubr.f32.vlgmr.msra.gmra.mrb[6].mxu0 %v46_v13 }
  0xaa   :  { %1176 = vmatmul.mubr.f32.vlgmr.msra.gmra.mrb[6].mxu1 %v47_v14 }
 0x11c   :  { %v242_v15 = vpop.f32.mrb[0].mxu0 }
 0x11d   :  { %736 = vst [vmem:[#allocation7] sm:$0xff] %v242_v15  ;;  %v312_v16 = vpop.f32.mrb[0].mxu1  ;;  %v932_v17 = vpop.f32.mrb[1].mxu0 }
 0x11e   :  { %737 = vst [vmem:[#allocation7 + $0x8] sm:$0xff] %v312_v16  ;;  %v967_v18 = vpop.f32.mrb[1].mxu1 }
 0x13c   :  { %v382_v19 = vpop.f32.mrb[2].mxu0 }
 0x13d   :  { %738 = vst [vmem:[#allocation7 + $0x10] sm:$0xff] %v382_v19  ;;  %v452_v20 = vpop.f32.mrb[2].mxu1  ;;  %v1002_v21 = vpop.f32.mrb[3].mxu0 }
 0x13e   :  { %739 = vst [vmem:[#allocation7 + $0x18] sm:$0xff] %v452_v20  ;;  %v1037_v22 = vpop.f32.mrb[3].mxu1 }
 0x15c   :  { %v522_v23 = vpop.f32.mrb[4].mxu0 }
 0x15d   :  { %740 = vst [vmem:[#allocation7 + $0x20] sm:$0xff] %v522_v23  ;;  %v592_v0 = vpop.f32.mrb[4].mxu1  ;;  %v1072_v24 = vpop.f32.mrb[5].mxu0 }
 0x15e   :  { %741 = vst [vmem:[#allocation7 + $0x28] sm:$0xff] %v592_v0  ;;  %v1107_v25 = vpop.f32.mrb[5].mxu1 }
 0x17c   :  { %v662_v26 = vpop.f32.mrb[6].mxu0 }
 0x17d   :  { %742 = vst [vmem:[#allocation7 + $0x30] sm:$0xff] %v662_v26  ;;  %v732_v27 = vpop.f32.mrb[6].mxu1  ;;  %v1142_v28 = vpop.f32.mrb[7].mxu0 }
 0x17e   :  { %743 = vst [vmem:[#allocation7 + $0x38] sm:$0xff] %v732_v27  ;;  %v1177_v29 = vpop.f32.mrb[7].mxu1 }
 0x17f   :  { %1433 = shalt.err (!%p1430_p6)
}
 0x180   :  { %s1434_s10 = scalar_lea.hbm %s1600_s2, 1024 }
 0x181   :  { %p1435_p7 = scmp.ne.s32.totalorder %s1600_s2, %s1434_s10  ;;  %p1438_p8 = scmp.lt.u32.totalorder %s1434_s10, %s1600_s2 }
 0x183   :  { %p1440_p9 = pnand %p1438_p8, %p1435_p7 }
 0x185   :  { %1443 = shalt.err (!%p1440_p9)
}
 0x186   :  { %755 = dma.vmem_to_hbm [thread:$0]  %s750_s6, 1024, %s1600_s2, [#allocation4], %s1451_s19, %s1451_s19, %s1452_s20  }
 0x187   :  { %1448 = dma.done.wait [#allocation4], 1024  }
 0x188   :  { %1449 = vsyncadd [#allocation4], 4294966272 }
 0x189   :  { %759 = vsyncpa [#allocation3], 1 }
 0x18a   :  { %760 = vsyncpa [#allocation6], 1 }
 0x18b   :  { %761 = vsyncpa [#allocation4], 1 }

</bundles_post_ra>
